<compile_context>
chip_gen: v7x
topology: tpu7x:2x2x1
jax: 0.10.0
libtpu: 0.0.40
codegen_flags: <defaults>
</compile_context>

<pallas_src>
import functools

import jax
import jax.numpy as jnp
from jax.experimental import pallas as pl
from jax.experimental.pallas import tpu as pltpu

INPUT_DIM = 8
OUTPUT_DIM = 1

_SUBLANES = 8
_LANES = 128
_GRAN = _SUBLANES * _LANES  # 1024 samples = one fully dense f32 output vreg


def _round_up(n, m):
    return (n + m - 1) // m * m


def _cdiv(n, m):
    return -(-n // m)


def _logreg_kernel(x_ref, w_ref, b_ref, o_ref):
    # x_ref: (D, 8, TB_sub) VMEM   -- x_ref[d] is a dense (8, TB_sub) slab
    # w_ref: (D,)  SMEM scalars
    # b_ref: (1,)  SMEM scalar
    # o_ref: (8, TB_sub) VMEM      -- dense output tile
    d_total = x_ref.shape[0]
    # D=8, O=1 cannot amortize the MXU; reduce over the leading axis instead
    # so every vreg stays fully occupied (VALU-only, no XLU packing needed).
    z = x_ref[0] * w_ref[0]
    for d in range(1, d_total):
        z = z + x_ref[d] * w_ref[d]
    z = z + b_ref[0]
    # sigmoid(z) = 1 / (1 + exp(-z)); exp rides the EUP.  Kernel is HBM-bound
    # after densification, so the exact reciprocal is free and keeps the
    # 1e-5 accuracy (approx=True would be ~1e-3-class relative error).
    o_ref[...] = pl.reciprocal(1.0 + jnp.exp(-z)).astype(o_ref.dtype)


@functools.partial(jax.jit, static_argnames=("batch_tile",))
def logistic_regression_forward(x, weight, bias, *, batch_tile=131072):
    """x: (B, input_dim) f32, weight: (output_dim, input_dim), bias: (output_dim,)."""
    B, D = x.shape
    O = weight.shape[0]
    assert O == 1, "kernel is specialized for output_dim == 1"

    # --- balanced batch tiling -------------------------------------------
    # Pad only to the dense-vreg granule (1024 samples), then split into
    # balanced tiles: waste is < n_tiles * 1024 samples instead of up to a
    # whole tile.  Force >=2 tiles at non-trivial B so v7x megacore splits it.
    B_g = _round_up(max(B, 1), _GRAN)
    n_tiles = _cdiv(B_g, batch_tile)
    if B_g >= 2 * _GRAN:
        n_tiles = max(n_tiles, 2)
    TB = _round_up(_cdiv(B_g, n_tiles), _GRAN)   # samples per grid step
    B_pad = TB * n_tiles
    TB_sub = TB // _SUBLANES                     # lane extent per grid step
    B_sub = B_pad // _SUBLANES

    # Dense layout: sample b -> (g, j) with g = b // B_sub (output sublane),
    # j = b % B_sub (lane).  x3[d, g, j] = x[b, d].
    x_pad = jnp.pad(x.astype(jnp.float32), ((0, B_pad - B), (0, 0)))
    x3 = x_pad.T.reshape(D, _SUBLANES, B_sub)

    w_s = weight.reshape(D).astype(jnp.float32)   # (D,) -> SMEM scalars
    b_s = bias.reshape(O).astype(jnp.float32)     # (1,) -> SMEM scalar

    out = pl.pallas_call(
        _logreg_kernel,
        out_shape=jax.ShapeDtypeStruct((_SUBLANES, B_sub), jnp.float32),
        grid_spec=pltpu.PrefetchScalarGridSpec(
            num_scalar_prefetch=0,
            grid=(n_tiles,),                      # tile over the batch axis
            in_specs=[
                pl.BlockSpec((D, _SUBLANES, TB_sub), lambda i: (0, 0, i)),
                pl.BlockSpec(memory_space=pltpu.MemorySpace.SMEM),   # weights
                pl.BlockSpec(memory_space=pltpu.MemorySpace.SMEM),   # bias
            ],
            out_specs=pl.BlockSpec((_SUBLANES, TB_sub), lambda i: (0, i)),
        ),
        compiler_params=pltpu.CompilerParams(
            dimension_semantics=("parallel",),         # megacore-shard on v7x
            allow_input_fusion=[True, False, False],   # fuse x pad/transpose in
            vmem_limit_bytes=32 * 1024 * 1024,         # headroom for v5e's 16 MiB default
        ),
    )(x3, w_s, b_s)

    # (8, B_sub) flattens row-major to batch order b = g*B_sub + j.
    return out.reshape(B_pad, 1)[:B]


if __name__ == "__main__":
    key = jax.random.PRNGKey(0)
    kx, kw, kb = jax.random.split(key, 3)

    batch = 8
    x = jax.random.normal(kx, (batch, INPUT_DIM), dtype=jnp.float32)

    # Deterministic parameter init (mimics nn.Linear's uniform(-1/sqrt(D), 1/sqrt(D)))
    bound = 1.0 / float(INPUT_DIM) ** 0.5
    weight = jax.random.uniform(kw, (OUTPUT_DIM, INPUT_DIM),
                                minval=-bound, maxval=bound, dtype=jnp.float32)
    bias = jax.random.uniform(kb, (OUTPUT_DIM,),
                              minval=-bound, maxval=bound, dtype=jnp.float32)

    out = logistic_regression_forward(x, weight, bias)
    out = jax.block_until_ready(out)

    # Sanity check against plain-JAX reference.
    ref = jax.nn.sigmoid(x @ weight.T + bias)
    assert out.shape == (batch, OUTPUT_DIM)
    assert jnp.allclose(out, ref, atol=1e-5, rtol=1e-5)

    print("KERNEL_OK")
</pallas_src>

<mosaic_0001>
module attributes {stable_mosaic.version = 11 : i64} {
  func.func @_logreg_kernel(%arg0: i32, %arg1: memref<8x8x128xf32, #tpu.memory_space<vmem>>, %arg2: memref<8xf32, #tpu.memory_space<smem>>, %arg3: memref<1xf32, #tpu.memory_space<smem>>, %arg4: memref<8x128xf32, #tpu.memory_space<vmem>>) attributes {dimension_semantics = [#tpu.dimension_semantics<parallel>], iteration_bounds = array<i64: 1>, scalar_prefetch = 0 : i64, scratch_operands = 0 : i64, tpu.core_type = #tpu.core_type<tc>, window_params = [{transform_indices = @transform_0, window_bounds = array<i64: 8, 8, 128>}, {transform_indices = @transform_1, window_bounds = array<i64: 8>}, {transform_indices = @transform_2, window_bounds = array<i64: 1>}, {transform_indices = @transform_3, window_bounds = array<i64: 8, 128>}]} {
    %c0 = arith.constant 0 : index
    %c0_0 = arith.constant 0 : index
    %c0_1 = arith.constant 0 : index
    %0 = vector.load %arg1[%c0, %c0_0, %c0_1] : memref<8x8x128xf32, #tpu.memory_space<vmem>>, vector<1x8x128xf32>
    %1 = vector.shape_cast %0 : vector<1x8x128xf32> to vector<8x128xf32>
    %c0_2 = arith.constant 0 : index
    %2 = memref.load %arg2[%c0_2] : memref<8xf32, #tpu.memory_space<smem>>
    %3 = vector.broadcast %2 : f32 to vector<8x128xf32>
    %4 = arith.mulf %1, %3 : vector<8x128xf32>
    %c1 = arith.constant 1 : index
    %c0_3 = arith.constant 0 : index
    %c0_4 = arith.constant 0 : index
    %5 = vector.load %arg1[%c1, %c0_3, %c0_4] : memref<8x8x128xf32, #tpu.memory_space<vmem>>, vector<1x8x128xf32>
    %6 = vector.shape_cast %5 : vector<1x8x128xf32> to vector<8x128xf32>
    %c1_5 = arith.constant 1 : index
    %7 = memref.load %arg2[%c1_5] : memref<8xf32, #tpu.memory_space<smem>>
    %8 = vector.broadcast %7 : f32 to vector<8x128xf32>
    %9 = arith.mulf %6, %8 : vector<8x128xf32>
    %10 = arith.addf %4, %9 : vector<8x128xf32>
    %c2 = arith.constant 2 : index
    %c0_6 = arith.constant 0 : index
    %c0_7 = arith.constant 0 : index
    %11 = vector.load %arg1[%c2, %c0_6, %c0_7] : memref<8x8x128xf32, #tpu.memory_space<vmem>>, vector<1x8x128xf32>
    %12 = vector.shape_cast %11 : vector<1x8x128xf32> to vector<8x128xf32>
    %c2_8 = arith.constant 2 : index
    %13 = memref.load %arg2[%c2_8] : memref<8xf32, #tpu.memory_space<smem>>
    %14 = vector.broadcast %13 : f32 to vector<8x128xf32>
    %15 = arith.mulf %12, %14 : vector<8x128xf32>
    %16 = arith.addf %10, %15 : vector<8x128xf32>
    %c3 = arith.constant 3 : index
    %c0_9 = arith.constant 0 : index
    %c0_10 = arith.constant 0 : index
    %17 = vector.load %arg1[%c3, %c0_9, %c0_10] : memref<8x8x128xf32, #tpu.memory_space<vmem>>, vector<1x8x128xf32>
    %18 = vector.shape_cast %17 : vector<1x8x128xf32> to vector<8x128xf32>
    %c3_11 = arith.constant 3 : index
    %19 = memref.load %arg2[%c3_11] : memref<8xf32, #tpu.memory_space<smem>>
    %20 = vector.broadcast %19 : f32 to vector<8x128xf32>
    %21 = arith.mulf %18, %20 : vector<8x128xf32>
    %22 = arith.addf %16, %21 : vector<8x128xf32>
    %c4 = arith.constant 4 : index
    %c0_12 = arith.constant 0 : index
    %c0_13 = arith.constant 0 : index
    %23 = vector.load %arg1[%c4, %c0_12, %c0_13] : memref<8x8x128xf32, #tpu.memory_space<vmem>>, vector<1x8x128xf32>
    %24 = vector.shape_cast %23 : vector<1x8x128xf32> to vector<8x128xf32>
    %c4_14 = arith.constant 4 : index
    %25 = memref.load %arg2[%c4_14] : memref<8xf32, #tpu.memory_space<smem>>
    %26 = vector.broadcast %25 : f32 to vector<8x128xf32>
    %27 = arith.mulf %24, %26 : vector<8x128xf32>
    %28 = arith.addf %22, %27 : vector<8x128xf32>
    %c5 = arith.constant 5 : index
    %c0_15 = arith.constant 0 : index
    %c0_16 = arith.constant 0 : index
    %29 = vector.load %arg1[%c5, %c0_15, %c0_16] : memref<8x8x128xf32, #tpu.memory_space<vmem>>, vector<1x8x128xf32>
    %30 = vector.shape_cast %29 : vector<1x8x128xf32> to vector<8x128xf32>
    %c5_17 = arith.constant 5 : index
    %31 = memref.load %arg2[%c5_17] : memref<8xf32, #tpu.memory_space<smem>>
    %32 = vector.broadcast %31 : f32 to vector<8x128xf32>
    %33 = arith.mulf %30, %32 : vector<8x128xf32>
    %34 = arith.addf %28, %33 : vector<8x128xf32>
    %c6 = arith.constant 6 : index
    %c0_18 = arith.constant 0 : index
    %c0_19 = arith.constant 0 : index
    %35 = vector.load %arg1[%c6, %c0_18, %c0_19] : memref<8x8x128xf32, #tpu.memory_space<vmem>>, vector<1x8x128xf32>
    %36 = vector.shape_cast %35 : vector<1x8x128xf32> to vector<8x128xf32>
    %c6_20 = arith.constant 6 : index
    %37 = memref.load %arg2[%c6_20] : memref<8xf32, #tpu.memory_space<smem>>
    %38 = vector.broadcast %37 : f32 to vector<8x128xf32>
    %39 = arith.mulf %36, %38 : vector<8x128xf32>
    %40 = arith.addf %34, %39 : vector<8x128xf32>
    %c7 = arith.constant 7 : index
    %c0_21 = arith.constant 0 : index
    %c0_22 = arith.constant 0 : index
    %41 = vector.load %arg1[%c7, %c0_21, %c0_22] : memref<8x8x128xf32, #tpu.memory_space<vmem>>, vector<1x8x128xf32>
    %42 = vector.shape_cast %41 : vector<1x8x128xf32> to vector<8x128xf32>
    %c7_23 = arith.constant 7 : index
    %43 = memref.load %arg2[%c7_23] : memref<8xf32, #tpu.memory_space<smem>>
    %44 = vector.broadcast %43 : f32 to vector<8x128xf32>
    %45 = arith.mulf %42, %44 : vector<8x128xf32>
    %46 = arith.addf %40, %45 : vector<8x128xf32>
    %c0_24 = arith.constant 0 : index
    %47 = memref.load %arg3[%c0_24] : memref<1xf32, #tpu.memory_space<smem>>
    %48 = vector.broadcast %47 : f32 to vector<8x128xf32>
    %49 = arith.addf %46, %48 : vector<8x128xf32>
    %cst = arith.constant 0.000000e+00 : f32
    %50 = vector.broadcast %cst : f32 to vector<8x128xf32>
    %51 = arith.subf %50, %49 : vector<8x128xf32>
    %52 = math.exp %51 : vector<8x128xf32>
    %cst_25 = arith.constant 1.000000e+00 : f32
    %53 = vector.broadcast %cst_25 : f32 to vector<8x128xf32>
    %54 = arith.addf %53, %52 : vector<8x128xf32>
    %55 = tpu.reciprocal %54 : vector<8x128xf32> -> vector<8x128xf32>
    %c0_26 = arith.constant 0 : index
    %c0_27 = arith.constant 0 : index
    %56 = vector.load %arg4[%c0_26, %c0_27] : memref<8x128xf32, #tpu.memory_space<vmem>>, vector<8x128xf32>
    tpu.vector_store %arg4[%c0_26, %c0_27], %55 {strides = array<i32>} : memref<8x128xf32, #tpu.memory_space<vmem>>, vector<8x128xf32>,
    return
  }
  func.func @transform_0(%arg0: i32) -> (i32, i32, i32) {
    %c0_i32 = arith.constant 0 : i32
    %c0_i32_0 = arith.constant 0 : i32
    %c0_i32_1 = arith.constant 0 : i32
    return %c0_i32, %c0_i32_0, %arg0 : i32, i32, i32
  }
  func.func @transform_1(%arg0: i32) -> i32 {
    %c0_i32 = arith.constant 0 : i32
    %c0_i32_0 = arith.constant 0 : i32
    return %c0_i32 : i32
  }
  func.func @transform_2(%arg0: i32) -> i32 {
    %c0_i32 = arith.constant 0 : i32
    %c0_i32_0 = arith.constant 0 : i32
    return %c0_i32 : i32
  }
  func.func @transform_3(%arg0: i32) -> (i32, i32) {
    %c0_i32 = arith.constant 0 : i32
    %c0_i32_0 = arith.constant 0 : i32
    return %c0_i32, %arg0 : i32, i32
  }
}

</mosaic_0001>

<bundles_post_ra>
// kernel: logistic_regression_forward.1
= control target key start
LH: loop header
LB: loop body
LE: loop exit
PB: predicated region body
PF: predicated region fallthrough
CT: control target
= control target key end

     0   :  { %9 = vsyncpa [#allocation4], 0  ;;  %s175_s0 = inlined_call_operand.vmem [shape: f32[8,8,128], index: 0, kind: input, shape index: {}]   ;;  %s176_s1 = inlined_call_operand.vmem [shape: f32[8], index: 1, kind: input, shape index: {}]   ;;  %s177_s2 = inlined_call_operand.<no memory space> [shape: f32[1], index: 2, kind: input, shape index: {}]   ;;  %s178_s3 = inlined_call_operand.vmem [shape: f32[8,128], index: 3, kind: output, shape index: {}]  }
   0x1   :  { %s18_s14 = sshll.u32 %s176_s1, 4  ;;  %s19_s14 = int_to_ptr.vmem [resolvable:$true] %s18_s14 }
   0x2   :  { %s107_s15 = scalar_lea.vmem %s19_s14, 16  ;;  %p112_p1 = scmp.lt.s32.totalorder %s19_s14, %s19_s14 }
   0x3   :  { %p108_p0 = scmp.ne.s32.totalorder %s19_s14, %s107_s15  ;;  %p113_p2 = scmp.lt.s32.totalorder %s107_s15, %s107_s15 }
   0x5   :  { %p114_p3 = por %p113_p2, %p112_p1 }
   0x7   :  { %p115_p4 = pnand %p114_p3, %p108_p0 }
   0x9   :  { %118 = shalt.err (!%p115_p4)
}
   0xa   :  { %s121_s16 = smov [#allocation3]  }
   0xb   :  { %21 = dma.vmem_to_smem %s19_s14, 16, %s121_s16, [#allocation4]  }
   0xc   :  { %119 = dma.done.wait [#allocation4], 16  }
   0xd   :  { %120 = vsyncadd [#allocation4], 4294967280 }
   0xe   :  { %27 = sfence }
   0xf   :  { %s29_s17 = sld [smem:[#allocation3]]  ;;  %s89_s18 = sld [smem:[#allocation3 + $0x1]]  ;;  %v28_v0 = vld [vmem:[%s175_s0] sm:$0xff]  ;;  %v88_v1 = vld [vmem:[%s175_s0 + $0x8] sm:$0xff]  ;;  %v90_v2 = vld [vmem:[%s175_s0 + $0x10] sm:$0xff]  ;;  %v75_v30 = vstv %s177_s2 }
  0x10   :  { %s91_s19 = sld [smem:[#allocation3 + $0x2]]  ;;  %s93_s20 = sld [smem:[#allocation3 + $0x3]]  ;;  %v92_v5 = vld [vmem:[%s175_s0 + $0x18] sm:$0xff]  ;;  %v94_v11 = vld [vmem:[%s175_s0 + $0x20] sm:$0xff]  ;;  %v96_v15 = vld [vmem:[%s175_s0 + $0x28] sm:$0xff] }
  0x11   :  { %s95_s21 = sld [smem:[#allocation3 + $0x4]]  ;;  %s97_s22 = sld [smem:[#allocation3 + $0x5]]  ;;  %v98_v19 = vld [vmem:[%s175_s0 + $0x30] sm:$0xff]  ;;  %v100_v23 = vld [vmem:[%s175_s0 + $0x38] sm:$0xff] }
  0x12   :  { %s99_s26 = sld [smem:[#allocation3 + $0x6]]  ;;  %s101_s4 = sld [smem:[#allocation3 + $0x7]] }
  0x15   :  { %v30_v3 = vstv %s29_s17  ;;  %v35_v4 = vstv %s89_s18 }
  0x16   :  { %v31_v6 = vmul.f32 %v30_v3, %v28_v0  ;;  %v36_v7 = vmul.f32 %v88_v1, %v35_v4  ;;  %v41_v8 = vstv %s91_s19  ;;  %v47_v9 = vstv %s93_s20 }
  0x17   :  { %v42_v10 = vmul.f32 %v90_v2, %v41_v8  ;;  %v53_v12 = vstv %s95_s21  ;;  %v48_v14 = vmul.f32 %v92_v5, %v47_v9  ;;  %v59_v16 = vstv %s97_s22 }
  0x18   :  { %v37_v13 = vadd.f32 %v36_v7, %v31_v6  ;;  %v54_v18 = vmul.f32 %v94_v11, %v53_v12  ;;  %v65_v20 = vstv %s99_s26  ;;  %v60_v22 = vmul.f32 %v96_v15, %v59_v16 }
  0x19   :  { %v71_v24 = vstv %s101_s4  ;;  %v66_v26 = vmul.f32 %v98_v19, %v65_v20 }
  0x1a   :  { %v43_v17 = vadd.f32 %v42_v10, %v37_v13  ;;  %v72_v28 = vmul.f32 %v100_v23, %v71_v24 }
  0x1c   :  { %v49_v21 = vadd.f32 %v48_v14, %v43_v17 }
  0x1e   :  { %v55_v25 = vadd.f32 %v54_v18, %v49_v21 }
  0x20   :  { %v61_v27 = vadd.f32 %v60_v22, %v55_v25 }
  0x22   :  { %v67_v29 = vadd.f32 %v66_v26, %v61_v27 }
  0x24   :  { %v73_v31 = vadd.f32 %v72_v28, %v67_v29 }
  0x26   :  { %v76_v32 = vadd.f32 %v75_v30, %v73_v31 }
  0x28   :  { %v77_v33 = vsub.f32 0.0, %v76_v32 }
  0x2a   :  { %v78_v34 = vmul.f32 1.442695, %v77_v33 }
  0x2c   :  { %103 = vpow2.f32 %v78_v34 }
  0x36   :  { %v104_v35 = vpop.eup %103 }
  0x37   :  { %v80_v36 = vadd.f32 1.0, %v104_v35 }
  0x39   :  { %105 = vrcp.f32 %v80_v36 }
  0x43   :  { %v106_v37 = vpop.eup %105 }
  0x44   :  { %82 = vst [vmem:[%s178_s3] sm:$0xff] %v106_v37 }
  0x45   :  { %87 = vsyncpa [#allocation4], 1 }

</bundles_post_ra>
